<compile_context>
chip_gen: v5e
topology: v5e:2x2
jax: 0.10.0
libtpu: 0.0.40
codegen_flags: <defaults>
</compile_context>

<pallas_src>
import jax
import jax.numpy as jnp
from jax.experimental import pallas as pl
from jax.experimental.pallas import tpu as pltpu

_HI = jax.lax.Precision.HIGHEST


# ---------------------------------------------------------------------------
# Fused kernel: out[o, :] = sum_i W_eff[o, i] * plane[i, :] + ring_const[o, :]
# ---------------------------------------------------------------------------
def _fused_kernel(x_ref, w_ref, o_ref):
    # x_ref : (12, nrows, 128) VMEM  — rows 0..8: zero-padded, flattened x1/x2/x4 channel planes
    #                                  rows 9..11: per-output-channel ring/bias constant planes
    # w_ref : (27,) SMEM             — folded W_eff, row-major (out_channel, input_plane)
    # o_ref : (3, nrows, 128) VMEM
    xp = [x_ref[i] for i in range(9)]          # lane-dense input planes (loaded once)
    for o in range(3):
        acc = x_ref[9 + o]                     # ring/bias constant plane for channel o
        for i in range(9):
            acc = acc + w_ref[o * 9 + i] * xp[i]
        o_ref[o] = acc                         # one full-width store per channel


# ---------------------------------------------------------------------------
# Parameters (deterministic, PyTorch-style uniform(-1/sqrt(fan_in), 1/sqrt(fan_in)))
# ---------------------------------------------------------------------------
def init_params(key):
    def u(k, shape, fan_in):
        bound = 1.0 / float(fan_in) ** 0.5
        return jax.random.uniform(k, shape, jnp.float32, -bound, bound)

    ks = jax.random.split(key, 12)
    return dict(
        W1=u(ks[0], (8, 3), 3), b1=u(ks[1], (8,), 3),     # conv1: Conv2d(3, 8, 1, padding=1)
        W2=u(ks[2], (8, 3), 3), b2=u(ks[3], (8,), 3),     # conv2
        W4=u(ks[4], (8, 3), 3), b4=u(ks[5], (8,), 3),     # conv4
        W5=u(ks[6], (8, 3), 3), b5=u(ks[7], (8,), 3),     # conv5: ConvTranspose2d(3, 8, 1) (eff. (out,in))
        W6=u(ks[8], (8, 8), 8), b6=u(ks[9], (8,), 8),     # conv6 (in_channels forced 3->8, see note)
        W7=u(ks[10], (3, 8), 8), b7=u(ks[11], (3,), 8),   # conv7 (in_channels forced 3->8, see note)
    )


# ---------------------------------------------------------------------------
# Forward (mirrors Model.forward)
# ---------------------------------------------------------------------------
def model_forward(params, x1, x2, x3, x4, x5):
    # TODO(synk): requires x1/x2/x4 to share a spatial size so v1+v2 / v3+v5 are well-defined
    #             (the reference shapes 64/63/61/60 would not broadcast in PyTorch).
    del x3  # v4 = conv3(x3) is dead in the reference graph -> never DMA'd / computed

    p = params
    H = x1.shape[2]
    S3 = H + 6
    flat = S3 * S3
    npad = ((flat + 127) // 128) * 128
    nrows = npad // 128

    mm = lambda a, b: jnp.matmul(a, b, precision=_HI)

    # ---- algebraic folding (weights + x5 only; hoisted out of the kernel) ----
    c5 = mm(p["W5"], x5.reshape(3)) + p["b5"]                 # conv5 on (1,3,1,1) -> 8-vector
    const7 = p["b1"] + p["b2"] + p["b4"] + c5                 # v7 value on its zero-pad ring
    t8 = mm(p["W6"], const7) + p["b6"]                        # v8 value on the const7 ring
    r0 = p["b7"]                                              # outermost output ring
    r1 = mm(p["W7"], p["b6"]) + p["b7"]                       # second ring
    r2 = mm(p["W7"], t8) + p["b7"]                            # third ring == interior bias b_eff
    W76 = mm(p["W7"], p["W6"])                                # (3, 8)
    w_eff = jnp.concatenate(
        [mm(W76, p["W1"]), mm(W76, p["W2"]), mm(W76, p["W4"])], axis=1)   # (3, 9)

    # ---- ring / bias constant planes (3, S3, S3): r0 / r1 / r2 by ring depth, r2 in interior ----
    row = jax.lax.broadcasted_iota(jnp.int32, (S3, S3), 0)
    col = jax.lax.broadcasted_iota(jnp.int32, (S3, S3), 1)
    d = jnp.minimum(jnp.minimum(row, col), jnp.minimum(S3 - 1 - row, S3 - 1 - col))
    ring = jnp.where(d[None] == 0, r0[:, None, None],
                     jnp.where(d[None] == 1, r1[:, None, None], r2[:, None, None]))

    # ---- pack everything into one lane-dense VMEM operand (layout plumbing only) ----
    xs = jnp.concatenate([x1[0], x2[0], x4[0]], axis=0)                   # (9, H, H)
    xpad = jnp.pad(xs, ((0, 0), (3, 3), (3, 3)))                          # (9, S3, S3), zero rings
    planes = jnp.concatenate([xpad, ring], axis=0).reshape(12, flat)      # (12, S3*S3)
    planes = jnp.pad(planes, ((0, 0), (0, npad - flat))).reshape(12, nrows, 128)

    out = pl.pallas_call(
        _fused_kernel,
        out_shape=jax.ShapeDtypeStruct((3, nrows, 128), jnp.float32),
        grid=(1,),
        in_specs=[
            pl.BlockSpec((12, nrows, 128), lambda i: (0, 0, 0)),          # packed planes (VMEM)
            pl.BlockSpec(memory_space=pltpu.MemorySpace.SMEM),            # W_eff (27 scalars)
        ],
        out_specs=pl.BlockSpec((3, nrows, 128), lambda i: (0, 0, 0)),
        compiler_params=pltpu.CompilerParams(dimension_semantics=("arbitrary",)),
    )(planes, w_eff.reshape(27))

    return out.reshape(3, npad)[:, :flat].reshape(1, 3, S3, S3)


# ---------------------------------------------------------------------------
# Pure-JAX per-layer reference of the (repaired) fused graph, for correctness check
# ---------------------------------------------------------------------------
def _conv1x1_pad(x, W, b, pad):
    xp = jnp.pad(x, ((0, 0), (pad, pad), (pad, pad)))
    return jnp.einsum("oc,chw->ohw", W, xp, precision=_HI) + b[:, None, None]


def reference_forward(params, x1, x2, x3, x4, x5):
    p = params
    v1 = _conv1x1_pad(x1[0], p["W1"], p["b1"], 1)
    v2 = _conv1x1_pad(x2[0], p["W2"], p["b2"], 1)
    v3 = v1 + v2
    # v4 = conv3(x3) is dead in the reference graph
    v5 = _conv1x1_pad(x4[0], p["W4"], p["b4"], 1)
    v6 = v3 + v5
    c5 = jnp.matmul(p["W5"], x5.reshape(3), precision=_HI) + p["b5"]
    v7 = v6 + c5[:, None, None]
    v8 = _conv1x1_pad(v7, p["W6"], p["b6"], 1)
    v9 = v8                                    # squeeze(dim=1) is a no-op (channel dim is 8)
    v10 = _conv1x1_pad(v9, p["W7"], p["b7"], 1)
    return v10[None]


if __name__ == "__main__":
    key = jax.random.PRNGKey(0)
    kp, k1, k2, k3, k4, k5 = jax.random.split(key, 6)
    params = init_params(kp)

    H = 16  # small spatial size; all conv inputs share it (see fidelity note above)
    x1 = jax.random.normal(k1, (1, 3, H, H), jnp.float32)
    x2 = jax.random.normal(k2, (1, 3, H, H), jnp.float32)
    x3 = jax.random.normal(k3, (1, 3, H, H), jnp.float32)  # unused (dead conv3 path)
    x4 = jax.random.normal(k4, (1, 3, H, H), jnp.float32)
    x5 = jax.random.normal(k5, (1, 3, 1, 1), jnp.float32)

    fwd = jax.jit(model_forward)
    out = fwd(params, x1, x2, x3, x4, x5)
    jax.block_until_ready(out)

    assert out.shape == (1, 3, H + 6, H + 6) and out.dtype == jnp.float32
    ref = reference_forward(params, x1, x2, x3, x4, x5)
    assert jnp.allclose(out, ref, atol=1e-4, rtol=1e-4), "mismatch vs per-layer JAX reference"
    print("KERNEL_OK")
</pallas_src>

<mosaic_0001>
module attributes {stable_mosaic.version = 11 : i64} {
  func.func @_fused_kernel(%arg0: i32, %arg1: memref<12x4x128xf32, #tpu.memory_space<vmem>>, %arg2: memref<27xf32, #tpu.memory_space<smem>>, %arg3: memref<3x4x128xf32, #tpu.memory_space<vmem>>) attributes {dimension_semantics = [#tpu.dimension_semantics<arbitrary>], iteration_bounds = array<i64: 1>, scalar_prefetch = 0 : i64, scratch_operands = 0 : i64, tpu.core_type = #tpu.core_type<tc>, window_params = [{pipeline_mode = #tpu.pipeline_mode<synchronous>, transform_indices = @transform_0, window_bounds = array<i64: 12, 4, 128>}, {transform_indices = @transform_1, window_bounds = array<i64: 27>}, {pipeline_mode = #tpu.pipeline_mode<synchronous>, transform_indices = @transform_2, window_bounds = array<i64: 3, 4, 128>}]} {
    %c0 = arith.constant 0 : index
    %c0_0 = arith.constant 0 : index
    %c0_1 = arith.constant 0 : index
    %0 = vector.load %arg1[%c0, %c0_0, %c0_1] : memref<12x4x128xf32, #tpu.memory_space<vmem>>, vector<1x4x128xf32>
    %1 = vector.shape_cast %0 : vector<1x4x128xf32> to vector<4x128xf32>
    %c1 = arith.constant 1 : index
    %c0_2 = arith.constant 0 : index
    %c0_3 = arith.constant 0 : index
    %2 = vector.load %arg1[%c1, %c0_2, %c0_3] : memref<12x4x128xf32, #tpu.memory_space<vmem>>, vector<1x4x128xf32>
    %3 = vector.shape_cast %2 : vector<1x4x128xf32> to vector<4x128xf32>
    %c2 = arith.constant 2 : index
    %c0_4 = arith.constant 0 : index
    %c0_5 = arith.constant 0 : index
    %4 = vector.load %arg1[%c2, %c0_4, %c0_5] : memref<12x4x128xf32, #tpu.memory_space<vmem>>, vector<1x4x128xf32>
    %5 = vector.shape_cast %4 : vector<1x4x128xf32> to vector<4x128xf32>
    %c3 = arith.constant 3 : index
    %c0_6 = arith.constant 0 : index
    %c0_7 = arith.constant 0 : index
    %6 = vector.load %arg1[%c3, %c0_6, %c0_7] : memref<12x4x128xf32, #tpu.memory_space<vmem>>, vector<1x4x128xf32>
    %7 = vector.shape_cast %6 : vector<1x4x128xf32> to vector<4x128xf32>
    %c4 = arith.constant 4 : index
    %c0_8 = arith.constant 0 : index
    %c0_9 = arith.constant 0 : index
    %8 = vector.load %arg1[%c4, %c0_8, %c0_9] : memref<12x4x128xf32, #tpu.memory_space<vmem>>, vector<1x4x128xf32>
    %9 = vector.shape_cast %8 : vector<1x4x128xf32> to vector<4x128xf32>
    %c5 = arith.constant 5 : index
    %c0_10 = arith.constant 0 : index
    %c0_11 = arith.constant 0 : index
    %10 = vector.load %arg1[%c5, %c0_10, %c0_11] : memref<12x4x128xf32, #tpu.memory_space<vmem>>, vector<1x4x128xf32>
    %11 = vector.shape_cast %10 : vector<1x4x128xf32> to vector<4x128xf32>
    %c6 = arith.constant 6 : index
    %c0_12 = arith.constant 0 : index
    %c0_13 = arith.constant 0 : index
    %12 = vector.load %arg1[%c6, %c0_12, %c0_13] : memref<12x4x128xf32, #tpu.memory_space<vmem>>, vector<1x4x128xf32>
    %13 = vector.shape_cast %12 : vector<1x4x128xf32> to vector<4x128xf32>
    %c7 = arith.constant 7 : index
    %c0_14 = arith.constant 0 : index
    %c0_15 = arith.constant 0 : index
    %14 = vector.load %arg1[%c7, %c0_14, %c0_15] : memref<12x4x128xf32, #tpu.memory_space<vmem>>, vector<1x4x128xf32>
    %15 = vector.shape_cast %14 : vector<1x4x128xf32> to vector<4x128xf32>
    %c8 = arith.constant 8 : index
    %c0_16 = arith.constant 0 : index
    %c0_17 = arith.constant 0 : index
    %16 = vector.load %arg1[%c8, %c0_16, %c0_17] : memref<12x4x128xf32, #tpu.memory_space<vmem>>, vector<1x4x128xf32>
    %17 = vector.shape_cast %16 : vector<1x4x128xf32> to vector<4x128xf32>
    %c9 = arith.constant 9 : index
    %c0_18 = arith.constant 0 : index
    %c0_19 = arith.constant 0 : index
    %18 = vector.load %arg1[%c9, %c0_18, %c0_19] : memref<12x4x128xf32, #tpu.memory_space<vmem>>, vector<1x4x128xf32>
    %19 = vector.shape_cast %18 : vector<1x4x128xf32> to vector<4x128xf32>
    %c0_20 = arith.constant 0 : index
    %20 = memref.load %arg2[%c0_20] : memref<27xf32, #tpu.memory_space<smem>>
    %21 = vector.broadcast %20 : f32 to vector<4x128xf32>
    %22 = arith.mulf %21, %1 : vector<4x128xf32>
    %23 = arith.addf %19, %22 : vector<4x128xf32>
    %c1_21 = arith.constant 1 : index
    %24 = memref.load %arg2[%c1_21] : memref<27xf32, #tpu.memory_space<smem>>
    %25 = vector.broadcast %24 : f32 to vector<4x128xf32>
    %26 = arith.mulf %25, %3 : vector<4x128xf32>
    %27 = arith.addf %23, %26 : vector<4x128xf32>
    %c2_22 = arith.constant 2 : index
    %28 = memref.load %arg2[%c2_22] : memref<27xf32, #tpu.memory_space<smem>>
    %29 = vector.broadcast %28 : f32 to vector<4x128xf32>
    %30 = arith.mulf %29, %5 : vector<4x128xf32>
    %31 = arith.addf %27, %30 : vector<4x128xf32>
    %c3_23 = arith.constant 3 : index
    %32 = memref.load %arg2[%c3_23] : memref<27xf32, #tpu.memory_space<smem>>
    %33 = vector.broadcast %32 : f32 to vector<4x128xf32>
    %34 = arith.mulf %33, %7 : vector<4x128xf32>
    %35 = arith.addf %31, %34 : vector<4x128xf32>
    %c4_24 = arith.constant 4 : index
    %36 = memref.load %arg2[%c4_24] : memref<27xf32, #tpu.memory_space<smem>>
    %37 = vector.broadcast %36 : f32 to vector<4x128xf32>
    %38 = arith.mulf %37, %9 : vector<4x128xf32>
    %39 = arith.addf %35, %38 : vector<4x128xf32>
    %c5_25 = arith.constant 5 : index
    %40 = memref.load %arg2[%c5_25] : memref<27xf32, #tpu.memory_space<smem>>
    %41 = vector.broadcast %40 : f32 to vector<4x128xf32>
    %42 = arith.mulf %41, %11 : vector<4x128xf32>
    %43 = arith.addf %39, %42 : vector<4x128xf32>
    %c6_26 = arith.constant 6 : index
    %44 = memref.load %arg2[%c6_26] : memref<27xf32, #tpu.memory_space<smem>>
    %45 = vector.broadcast %44 : f32 to vector<4x128xf32>
    %46 = arith.mulf %45, %13 : vector<4x128xf32>
    %47 = arith.addf %43, %46 : vector<4x128xf32>
    %c7_27 = arith.constant 7 : index
    %48 = memref.load %arg2[%c7_27] : memref<27xf32, #tpu.memory_space<smem>>
    %49 = vector.broadcast %48 : f32 to vector<4x128xf32>
    %50 = arith.mulf %49, %15 : vector<4x128xf32>
    %51 = arith.addf %47, %50 : vector<4x128xf32>
    %c8_28 = arith.constant 8 : index
    %52 = memref.load %arg2[%c8_28] : memref<27xf32, #tpu.memory_space<smem>>
    %53 = vector.broadcast %52 : f32 to vector<4x128xf32>
    %54 = arith.mulf %53, %17 : vector<4x128xf32>
    %55 = arith.addf %51, %54 : vector<4x128xf32>
    %c0_29 = arith.constant 0 : index
    %c0_30 = arith.constant 0 : index
    %c0_31 = arith.constant 0 : index
    %56 = vector.load %arg3[%c0_29, %c0_30, %c0_31] : memref<3x4x128xf32, #tpu.memory_space<vmem>>, vector<1x4x128xf32>
    %57 = vector.shape_cast %56 : vector<1x4x128xf32> to vector<4x128xf32>
    %58 = vector.shape_cast %55 : vector<4x128xf32> to vector<1x4x128xf32>
    tpu.vector_store %arg3[%c0_29, %c0_30, %c0_31], %58 {strides = array<i32>} : memref<3x4x128xf32, #tpu.memory_space<vmem>>, vector<1x4x128xf32>,
    %c10 = arith.constant 10 : index
    %c0_32 = arith.constant 0 : index
    %c0_33 = arith.constant 0 : index
    %59 = vector.load %arg1[%c10, %c0_32, %c0_33] : memref<12x4x128xf32, #tpu.memory_space<vmem>>, vector<1x4x128xf32>
    %60 = vector.shape_cast %59 : vector<1x4x128xf32> to vector<4x128xf32>
    %c9_34 = arith.constant 9 : index
    %61 = memref.load %arg2[%c9_34] : memref<27xf32, #tpu.memory_space<smem>>
    %62 = vector.broadcast %61 : f32 to vector<4x128xf32>
    %63 = arith.mulf %62, %1 : vector<4x128xf32>
    %64 = arith.addf %60, %63 : vector<4x128xf32>
    %c10_35 = arith.constant 10 : index
    %65 = memref.load %arg2[%c10_35] : memref<27xf32, #tpu.memory_space<smem>>
    %66 = vector.broadcast %65 : f32 to vector<4x128xf32>
    %67 = arith.mulf %66, %3 : vector<4x128xf32>
    %68 = arith.addf %64, %67 : vector<4x128xf32>
    %c11 = arith.constant 11 : index
    %69 = memref.load %arg2[%c11] : memref<27xf32, #tpu.memory_space<smem>>
    %70 = vector.broadcast %69 : f32 to vector<4x128xf32>
    %71 = arith.mulf %70, %5 : vector<4x128xf32>
    %72 = arith.addf %68, %71 : vector<4x128xf32>
    %c12 = arith.constant 12 : index
    %73 = memref.load %arg2[%c12] : memref<27xf32, #tpu.memory_space<smem>>
    %74 = vector.broadcast %73 : f32 to vector<4x128xf32>
    %75 = arith.mulf %74, %7 : vector<4x128xf32>
    %76 = arith.addf %72, %75 : vector<4x128xf32>
    %c13 = arith.constant 13 : index
    %77 = memref.load %arg2[%c13] : memref<27xf32, #tpu.memory_space<smem>>
    %78 = vector.broadcast %77 : f32 to vector<4x128xf32>
    %79 = arith.mulf %78, %9 : vector<4x128xf32>
    %80 = arith.addf %76, %79 : vector<4x128xf32>
    %c14 = arith.constant 14 : index
    %81 = memref.load %arg2[%c14] : memref<27xf32, #tpu.memory_space<smem>>
    %82 = vector.broadcast %81 : f32 to vector<4x128xf32>
    %83 = arith.mulf %82, %11 : vector<4x128xf32>
    %84 = arith.addf %80, %83 : vector<4x128xf32>
    %c15 = arith.constant 15 : index
    %85 = memref.load %arg2[%c15] : memref<27xf32, #tpu.memory_space<smem>>
    %86 = vector.broadcast %85 : f32 to vector<4x128xf32>
    %87 = arith.mulf %86, %13 : vector<4x128xf32>
    %88 = arith.addf %84, %87 : vector<4x128xf32>
    %c16 = arith.constant 16 : index
    %89 = memref.load %arg2[%c16] : memref<27xf32, #tpu.memory_space<smem>>
    %90 = vector.broadcast %89 : f32 to vector<4x128xf32>
    %91 = arith.mulf %90, %15 : vector<4x128xf32>
    %92 = arith.addf %88, %91 : vector<4x128xf32>
    %c17 = arith.constant 17 : index
    %93 = memref.load %arg2[%c17] : memref<27xf32, #tpu.memory_space<smem>>
    %94 = vector.broadcast %93 : f32 to vector<4x128xf32>
    %95 = arith.mulf %94, %17 : vector<4x128xf32>
    %96 = arith.addf %92, %95 : vector<4x128xf32>
    %c1_36 = arith.constant 1 : index
    %c0_37 = arith.constant 0 : index
    %c0_38 = arith.constant 0 : index
    %97 = vector.load %arg3[%c1_36, %c0_37, %c0_38] : memref<3x4x128xf32, #tpu.memory_space<vmem>>, vector<1x4x128xf32>
    %98 = vector.shape_cast %97 : vector<1x4x128xf32> to vector<4x128xf32>
    %99 = vector.shape_cast %96 : vector<4x128xf32> to vector<1x4x128xf32>
    tpu.vector_store %arg3[%c1_36, %c0_37, %c0_38], %99 {strides = array<i32>} : memref<3x4x128xf32, #tpu.memory_space<vmem>>, vector<1x4x128xf32>,
    %c11_39 = arith.constant 11 : index
    %c0_40 = arith.constant 0 : index
    %c0_41 = arith.constant 0 : index
    %100 = vector.load %arg1[%c11_39, %c0_40, %c0_41] : memref<12x4x128xf32, #tpu.memory_space<vmem>>, vector<1x4x128xf32>
    %101 = vector.shape_cast %100 : vector<1x4x128xf32> to vector<4x128xf32>
    %c18 = arith.constant 18 : index
    %102 = memref.load %arg2[%c18] : memref<27xf32, #tpu.memory_space<smem>>
    %103 = vector.broadcast %102 : f32 to vector<4x128xf32>
    %104 = arith.mulf %103, %1 : vector<4x128xf32>
    %105 = arith.addf %101, %104 : vector<4x128xf32>
    %c19 = arith.constant 19 : index
    %106 = memref.load %arg2[%c19] : memref<27xf32, #tpu.memory_space<smem>>
    %107 = vector.broadcast %106 : f32 to vector<4x128xf32>
    %108 = arith.mulf %107, %3 : vector<4x128xf32>
    %109 = arith.addf %105, %108 : vector<4x128xf32>
    %c20 = arith.constant 20 : index
    %110 = memref.load %arg2[%c20] : memref<27xf32, #tpu.memory_space<smem>>
    %111 = vector.broadcast %110 : f32 to vector<4x128xf32>
    %112 = arith.mulf %111, %5 : vector<4x128xf32>
    %113 = arith.addf %109, %112 : vector<4x128xf32>
    %c21 = arith.constant 21 : index
    %114 = memref.load %arg2[%c21] : memref<27xf32, #tpu.memory_space<smem>>
    %115 = vector.broadcast %114 : f32 to vector<4x128xf32>
    %116 = arith.mulf %115, %7 : vector<4x128xf32>
    %117 = arith.addf %113, %116 : vector<4x128xf32>
    %c22 = arith.constant 22 : index
    %118 = memref.load %arg2[%c22] : memref<27xf32, #tpu.memory_space<smem>>
    %119 = vector.broadcast %118 : f32 to vector<4x128xf32>
    %120 = arith.mulf %119, %9 : vector<4x128xf32>
    %121 = arith.addf %117, %120 : vector<4x128xf32>
    %c23 = arith.constant 23 : index
    %122 = memref.load %arg2[%c23] : memref<27xf32, #tpu.memory_space<smem>>
    %123 = vector.broadcast %122 : f32 to vector<4x128xf32>
    %124 = arith.mulf %123, %11 : vector<4x128xf32>
    %125 = arith.addf %121, %124 : vector<4x128xf32>
    %c24 = arith.constant 24 : index
    %126 = memref.load %arg2[%c24] : memref<27xf32, #tpu.memory_space<smem>>
    %127 = vector.broadcast %126 : f32 to vector<4x128xf32>
    %128 = arith.mulf %127, %13 : vector<4x128xf32>
    %129 = arith.addf %125, %128 : vector<4x128xf32>
    %c25 = arith.constant 25 : index
    %130 = memref.load %arg2[%c25] : memref<27xf32, #tpu.memory_space<smem>>
    %131 = vector.broadcast %130 : f32 to vector<4x128xf32>
    %132 = arith.mulf %131, %15 : vector<4x128xf32>
    %133 = arith.addf %129, %132 : vector<4x128xf32>
    %c26 = arith.constant 26 : index
    %134 = memref.load %arg2[%c26] : memref<27xf32, #tpu.memory_space<smem>>
    %135 = vector.broadcast %134 : f32 to vector<4x128xf32>
    %136 = arith.mulf %135, %17 : vector<4x128xf32>
    %137 = arith.addf %133, %136 : vector<4x128xf32>
    %c2_42 = arith.constant 2 : index
    %c0_43 = arith.constant 0 : index
    %c0_44 = arith.constant 0 : index
    %138 = vector.load %arg3[%c2_42, %c0_43, %c0_44] : memref<3x4x128xf32, #tpu.memory_space<vmem>>, vector<1x4x128xf32>
    %139 = vector.shape_cast %138 : vector<1x4x128xf32> to vector<4x128xf32>
    %140 = vector.shape_cast %137 : vector<4x128xf32> to vector<1x4x128xf32>
    tpu.vector_store %arg3[%c2_42, %c0_43, %c0_44], %140 {strides = array<i32>} : memref<3x4x128xf32, #tpu.memory_space<vmem>>, vector<1x4x128xf32>,
    return
  }
  func.func @transform_0(%arg0: i32) -> (i32, i32, i32) {
    %c0_i32 = arith.constant 0 : i32
    %c0_i32_0 = arith.constant 0 : i32
    %c0_i32_1 = arith.constant 0 : i32
    %c0_i32_2 = arith.constant 0 : i32
    return %c0_i32, %c0_i32_0, %c0_i32_1 : i32, i32, i32
  }
  func.func @transform_1(%arg0: i32) -> i32 {
    %c0_i32 = arith.constant 0 : i32
    %c0_i32_0 = arith.constant 0 : i32
    return %c0_i32 : i32
  }
  func.func @transform_2(%arg0: i32) -> (i32, i32, i32) {
    %c0_i32 = arith.constant 0 : i32
    %c0_i32_0 = arith.constant 0 : i32
    %c0_i32_1 = arith.constant 0 : i32
    %c0_i32_2 = arith.constant 0 : i32
    return %c0_i32, %c0_i32_0, %c0_i32_1 : i32, i32, i32
  }
}

</mosaic_0001>

<bundles_post_ra>
// kernel: model_forward.1
= control target key start
LH: loop header
LB: loop body
LE: loop exit
PB: predicated region body
PF: predicated region fallthrough
CT: control target
= control target key end

     0   :  { %7 = vsyncpa [#allocation3], 0  ;;  %s219_s12 = smov [#allocation2]   ;;  %s370_s0 = inlined_call_operand.vmem [shape: f32[12,4,128], index: 0, kind: input, shape index: {}]   ;;  %s371_s1 = inlined_call_operand.vmem [shape: f32[27], index: 1, kind: input, shape index: {}]   ;;  %s372_s2 = inlined_call_operand.vmem [shape: f32[3,4,128], index: 2, kind: output, shape index: {}]  }
   0x1   :  { %s15_s11 = sshll.u32 %s371_s1, 4  ;;  %s16_s11 = int_to_ptr.vmem [resolvable:$true] %s15_s11 }
   0x2   :  { %18 = dma.vmem_to_smem %s16_s11, 16, %s219_s12, [#allocation3]  }
   0x3   :  { %217 = dma.done.wait [#allocation3], 16  }
   0x4   :  { %218 = vsyncadd [#allocation3], 4294967280 }
   0x5   :  { %23 = sfence }
   0x6   :  { %s43_s13 = sld [smem:[#allocation2]]  ;;  %v241_v0 = vld [vmem:[%s370_s0] sm:$0xf]  ;;  %v246_v1 = vld [vmem:[%s370_s0 + $0x4] sm:$0xf] }
   0x7   :  { %s174_s14 = sld [smem:[#allocation2 + $0x1]]  ;;  %v253_v2 = vld [vmem:[%s370_s0 + $0x8] sm:$0xf]  ;;  %v173_v3 = vld [vmem:[%s370_s0 + $0x24] sm:$0xf] }
   0x8   :  { %s175_s15 = sld [smem:[#allocation2 + $0x2]]  ;;  %v266_v7 = vld [vmem:[%s370_s0 + $0xc] sm:$0xf]  ;;  %v275_v13 = vld [vmem:[%s370_s0 + $0x10] sm:$0xf] }
   0x9   :  { %s176_s16 = sld [smem:[#allocation2 + $0x3]]  ;;  %v281_v17 = vld [vmem:[%s370_s0 + $0x14] sm:$0xf]  ;;  %v292_v21 = vld [vmem:[%s370_s0 + $0x18] sm:$0xf] }
   0xa   :  { %s177_s19 = sld [smem:[#allocation2 + $0x4]]  ;;  %v182_v25 = vld [vmem:[%s370_s0 + $0x28] sm:$0xf]  ;;  %v306_v27 = vld [vmem:[%s370_s0 + $0x1c] sm:$0xf] }
   0xb   :  { %s248_s1 = sld [smem:[#allocation2 + $0x5]]  ;;  %v319_v35 = vld [vmem:[%s370_s0 + $0x20] sm:$0xf]  ;;  %v193_v54 = vld [vmem:[%s370_s0 + $0x2c] sm:$0xf] }
   0xc   :  { %v44_v4 = vstv %s43_s13  ;;  %s258_s26 = sld [smem:[#allocation2 + $0x6]] }
   0xd   :  { %v45_v5 = vmul.f32 %v44_v4, %v241_v0  ;;  %v48_v6 = vstv %s174_s14  ;;  %s261_s27 = sld [smem:[#allocation2 + $0x7]] }
   0xe   :  { %v49_v8 = vmul.f32 %v246_v1, %v48_v6  ;;  %v52_v9 = vstv %s175_s15  ;;  %s269_s30 = sld [smem:[#allocation2 + $0x8]] }
   0xf   :  { %v46_v10 = vadd.f32 %v173_v3, %v45_v5  ;;  %v53_v11 = vmul.f32 %v253_v2, %v52_v9  ;;  %v56_v12 = vstv %s176_s16  ;;  %s183_s3 = sld [smem:[#allocation2 + $0x9]] }
  0x10   :  { %v60_v14 = vstv %s177_s19  ;;  %s184_s6 = sld [smem:[#allocation2 + $0xa]]  ;;  %v57_v16 = vmul.f32 %v266_v7, %v56_v12 }
  0x11   :  { %v50_v15 = vadd.f32 %v49_v8, %v46_v10  ;;  %s185_s7 = sld [smem:[#allocation2 + $0xb]]  ;;  %v64_v18 = vstv %s248_s1  ;;  %v61_v20 = vmul.f32 %v275_v13, %v60_v14 }
  0x12   :  { %s284_s10 = sld [smem:[#allocation2 + $0xc]]  ;;  %v68_v22 = vstv %s258_s26  ;;  %v65_v24 = vmul.f32 %v281_v17, %v64_v18 }
  0x13   :  { %v54_v19 = vadd.f32 %v53_v11, %v50_v15  ;;  %s287_s11 = sld [smem:[#allocation2 + $0xd]]  ;;  %v72_v28 = vstv %s261_s27  ;;  %v69_v32 = vmul.f32 %v292_v21, %v68_v22 }
  0x14   :  { %s295_s14 = sld [smem:[#allocation2 + $0xe]]  ;;  %v76_v36 = vstv %s269_s30  ;;  %v73_v41 = vmul.f32 %v306_v27, %v72_v28 }
  0x15   :  { %v58_v23 = vadd.f32 %v57_v16, %v54_v19  ;;  %v83_v26 = vstv %s183_s3  ;;  %s301_s17 = sld [smem:[#allocation2 + $0xf]]  ;;  %v77_v46 = vmul.f32 %v319_v35, %v76_v36 }
  0x16   :  { %v84_v29 = vmul.f32 %v83_v26, %v241_v0  ;;  %v87_v30 = vstv %s184_s6  ;;  %s310_s20 = sld [smem:[#allocation2 + $0x10]] }
  0x17   :  { %v62_v31 = vadd.f32 %v61_v20, %v58_v23  ;;  %v88_v33 = vmul.f32 %v246_v1, %v87_v30  ;;  %v91_v34 = vstv %s185_s7  ;;  %s314_s21 = sld [smem:[#allocation2 + $0x11]] }
  0x18   :  { %v85_v37 = vadd.f32 %v182_v25, %v84_v29  ;;  %v92_v38 = vmul.f32 %v253_v2, %v91_v34  ;;  %v95_v39 = vstv %s284_s10  ;;  %s194_s23 = sld [smem:[#allocation2 + $0x12]] }
  0x19   :  { %v66_v40 = vadd.f32 %v65_v24, %v62_v31  ;;  %v99_v42 = vstv %s287_s11  ;;  %s195_s24 = sld [smem:[#allocation2 + $0x13]]  ;;  %v96_v44 = vmul.f32 %v266_v7, %v95_v39 }
  0x1a   :  { %v89_v43 = vadd.f32 %v88_v33, %v85_v37  ;;  %s196_s25 = sld [smem:[#allocation2 + $0x14]]  ;;  %v103_v47 = vstv %s295_s14  ;;  %v100_v49 = vmul.f32 %v275_v13, %v99_v42 }
  0x1b   :  { %v70_v45 = vadd.f32 %v69_v32, %v66_v40  ;;  %s329_s26 = sld [smem:[#allocation2 + $0x15]]  ;;  %v107_v51 = vstv %s301_s17  ;;  %v104_v53 = vmul.f32 %v281_v17, %v103_v47 }
  0x1c   :  { %v93_v48 = vadd.f32 %v92_v38, %v89_v43  ;;  %s332_s27 = sld [smem:[#allocation2 + $0x16]]  ;;  %v111_v57 = vstv %s310_s20  ;;  %v108_v61 = vmul.f32 %v292_v21, %v107_v51 }
  0x1d   :  { %v74_v50 = vadd.f32 %v73_v41, %v70_v45  ;;  %s335_s28 = sld [smem:[#allocation2 + $0x17]]  ;;  %v115_v3 = vstv %s314_s21  ;;  %v112_v8 = vmul.f32 %v306_v27, %v111_v57 }
  0x1e   :  { %v97_v52 = vadd.f32 %v96_v44, %v93_v48  ;;  %v123_v55 = vstv %s194_s23  ;;  %s341_s3 = sld [smem:[#allocation2 + $0x18]]  ;;  %v116_v12 = vmul.f32 %v319_v35, %v115_v3 }
  0x1f   :  { %v78_v56 = vadd.f32 %v77_v46, %v74_v50  ;;  %v124_v58 = vmul.f32 %v123_v55, %v241_v0  ;;  %v127_v59 = vstv %s195_s24  ;;  %s201_s4 = sld [smem:[#allocation2 + $0x19]] }
  0x20   :  { %v101_v60 = vadd.f32 %v100_v49, %v97_v52  ;;  %v128_v62 = vmul.f32 %v246_v1, %v127_v59  ;;  %v131_v63 = vstv %s196_s25  ;;  %s202_s6 = sld [smem:[#allocation2 + $0x1a]] }
  0x21   :  { %79 = vst [vmem:[%s372_s2] sm:$0xf] %v78_v56  ;;  %v125_v4 = vadd.f32 %v193_v54, %v124_v58  ;;  %v132_v5 = vmul.f32 %v253_v2, %v131_v63  ;;  %v135_v6 = vstv %s329_s26 }
  0x22   :  { %v105_v0 = vadd.f32 %v104_v53, %v101_v60  ;;  %v139_v9 = vstv %s332_s27  ;;  %v136_v1 = vmul.f32 %v266_v7, %v135_v6 }
  0x23   :  { %v129_v10 = vadd.f32 %v128_v62, %v125_v4  ;;  %v143_v14 = vstv %s335_s28  ;;  %v140_v16 = vmul.f32 %v275_v13, %v139_v9 }
  0x24   :  { %v109_v11 = vadd.f32 %v108_v61, %v105_v0  ;;  %v147_v19 = vstv %s341_s3  ;;  %v144_v2 = vmul.f32 %v281_v17, %v143_v14 }
  0x25   :  { %v133_v15 = vadd.f32 %v132_v5, %v129_v10  ;;  %v151_v23 = vstv %s201_s4  ;;  %v148_v25 = vmul.f32 %v292_v21, %v147_v19 }
  0x26   :  { %v113_v18 = vadd.f32 %v112_v8, %v109_v11  ;;  %v155_v7 = vstv %s202_s6  ;;  %v152_v28 = vmul.f32 %v306_v27, %v151_v23 }
  0x27   :  { %v137_v20 = vadd.f32 %v136_v1, %v133_v15  ;;  %v156_v13 = vmul.f32 %v319_v35, %v155_v7 }
  0x28   :  { %v117_v22 = vadd.f32 %v116_v12, %v113_v18 }
  0x29   :  { %v141_v24 = vadd.f32 %v140_v16, %v137_v20 }
  0x2a   :  { %192 = vst [vmem:[%s372_s2 + $0x4] sm:$0xf] %v117_v22 }
  0x2b   :  { %v145_v26 = vadd.f32 %v144_v2, %v141_v24 }
  0x2d   :  { %v149_v29 = vadd.f32 %v148_v25, %v145_v26 }
  0x2f   :  { %v153_v30 = vadd.f32 %v152_v28, %v149_v29 }
  0x31   :  { %v157_v31 = vadd.f32 %v156_v13, %v153_v30 }
  0x33   :  { %203 = vst [vmem:[%s372_s2 + $0x8] sm:$0xf] %v157_v31 }
  0x34   :  { %164 = vsyncpa [#allocation3], 1 }

</bundles_post_ra>
